<compile_context>
chip_gen: v7x
topology: tpu7x:2x2x1
jax: 0.10.0
libtpu: 0.0.40
codegen_flags: <defaults>
</compile_context>

<pallas_src>
import jax
import jax.numpy as jnp
from jax import lax
from jax.experimental import pallas as pl
from jax.experimental.pallas import tpu as pltpu


def _conv3x3s2_kernel(em_ref, ex_ref, od_ref, w_ref, b_ref, out_ref):
    """One (batch, output-row-block) step of the fused 3x3 / stride-2 conv.

    em_ref : (TR,   Wo+1, 2C)  even padded rows 2*t,  t in [r*TR, (r+1)*TR)
    ex_ref : (1,    Wo+1, 2C)  even padded row  2*(r+1)*TR  (overlap row)
    od_ref : (TR,   Wo+1, 2C)  odd  padded rows 2*t+1
    w_ref  : (6, 2C, C)  packed weights: [2*kh]   = [W(kh,kw=0); W(kh,kw=1)]
                                          [2*kh+1] = [W(kh,kw=2); 0        ]
    b_ref  : (1, C)
    out_ref: (TR, Wo, C)
    """
    tr, wo1, c2 = em_ref.shape
    wo = wo1 - 1
    co = out_ref.shape[-1]

    # Even rows needed for this block: rows r*TR .. r*TR+TR (inclusive).
    e_all = jnp.concatenate([em_ref[...], ex_ref[...]], axis=0)   # (TR+1, Wo+1, 2C)
    srcs = (e_all[0:tr],          # kh = 0 : padded rows 2*t
            od_ref[...],          # kh = 1 : padded rows 2*t + 1
            e_all[1:tr + 1])      # kh = 2 : padded rows 2*t + 2

    acc = jnp.zeros((tr * wo, co), jnp.float32)
    for kh in range(3):
        s = srcs[kh]                                   # (TR, Wo+1, 2C)
        # pair ow   -> lanes [0:C]=col 2*ow, [C:2C]=col 2*ow+1  (taps kw=0, kw=1)
        a = s[:, 0:wo, :].reshape(tr * wo, c2)
        # pair ow+1 -> lanes [0:C]=col 2*ow+2               (tap kw=2; odd half zeroed in W)
        bv = s[:, 1:wo1, :].reshape(tr * wo, c2)
        acc = acc + jnp.dot(a, w_ref[2 * kh], preferred_element_type=jnp.float32)
        acc = acc + jnp.dot(bv, w_ref[2 * kh + 1], preferred_element_type=jnp.float32)

    acc = acc + b_ref[...]
    out_ref[...] = acc.reshape(tr, wo, co).astype(out_ref.dtype)


def _choose_row_block(ho, wo1, c2, co, elem_bytes=4, budget=4 * 1024 * 1024):
    """Largest divisor of Ho whose double-buffered tiles fit the VMEM budget."""
    best = 1
    for tr in range(1, ho + 1):
        if ho % tr:
            continue
        in_bytes = (2 * tr + 1) * wo1 * c2 * elem_bytes          # E main + extra + O
        out_bytes = tr * (wo1 - 1) * co * elem_bytes
        if 2 * (in_bytes + out_bytes) <= budget:                 # double buffered
            best = tr
    return best


@jax.jit
def downsamples_pallas(x_nchw, weight, bias, time_emb=None):
    """x_nchw: (B, C, H, W); weight: (C, C, 3, 3) OIHW; bias: (C,)."""
    del time_emb  # DownSamples.forward ignores time_emb.
    b, c, h, w = x_nchw.shape
    ho = (h + 1) // 2
    wo = (w + 1) // 2
    wo1 = wo + 1
    c2 = 2 * c
    hp = 2 * ho + 2                      # padded rows (>= H+2, handles odd H)
    wp = 2 * wo + 2                      # padded cols (>= W+2, handles odd W)

    # ---- wrapper: layout only (no im2col) -----------------------------------
    x_nhwc = jnp.transpose(x_nchw, (0, 2, 3, 1))
    xp = jnp.pad(x_nhwc, ((0, 0), (1, hp - h - 1), (1, wp - w - 1), (0, 0)))
    # Fold W column-pairs into lanes (free, contiguous reshape):
    #   lanes [0:C] = even padded column, [C:2C] = odd padded column.
    xpr = xp.reshape(b, hp, wo1, c2)
    x_even = xpr[:, 0::2]                # (B, Ho+1, Wo+1, 2C): padded rows 0,2,...
    x_odd = xpr[:, 1::2]                 # (B, Ho+1, Wo+1, 2C): padded rows 1,3,...

    # ---- pack weights: per kernel-row kh two (2C, C) matrices ---------------
    wt = jnp.transpose(weight, (2, 3, 1, 0))          # (kh, kw, ci, co)
    zero_blk = jnp.zeros((c, c), weight.dtype)
    packs = []
    for kh in range(3):
        packs.append(jnp.concatenate([wt[kh, 0], wt[kh, 1]], axis=0))   # kw=0,1
        packs.append(jnp.concatenate([wt[kh, 2], zero_blk], axis=0))    # kw=2
    w_pack = jnp.stack(packs, axis=0).astype(jnp.float32)               # (6, 2C, C)
    b_row = bias[None, :].astype(jnp.float32)                           # (1, C)

    # ---- tiling --------------------------------------------------------------
    tr = _choose_row_block(ho, wo1, c2, c)
    n_r = ho // tr

    out_nhwc = pl.pallas_call(
        _conv3x3s2_kernel,
        out_shape=jax.ShapeDtypeStruct((b, ho, wo, c), x_nchw.dtype),
        grid_spec=pl.GridSpec(
            grid=(b, n_r),
            in_specs=[
                # even rows, main TR-row block
                pl.BlockSpec((None, tr, wo1, c2), lambda bi, ri: (bi, ri, 0, 0)),
                # even rows, single overlap row (block size 1 -> element index)
                pl.BlockSpec((None, 1, wo1, c2),
                             lambda bi, ri: (bi, (ri + 1) * tr, 0, 0)),
                # odd rows, TR-row block
                pl.BlockSpec((None, tr, wo1, c2), lambda bi, ri: (bi, ri, 0, 0)),
                # packed weights / bias: grid-invariant, stay resident in VMEM
                pl.BlockSpec((6, c2, c), lambda bi, ri: (0, 0, 0)),
                pl.BlockSpec((1, c), lambda bi, ri: (0, 0)),
            ],
            out_specs=pl.BlockSpec((None, tr, wo, c), lambda bi, ri: (bi, ri, 0, 0)),
        ),
        compiler_params=pltpu.CompilerParams(
            dimension_semantics=("parallel", "parallel")),
    )(x_even, x_even, x_odd, w_pack, b_row)

    # Only epilogue pass: NHWC -> NCHW (push into the consumer when possible).
    return jnp.transpose(out_nhwc, (0, 3, 1, 2))


def downsamples_reference(x, weight, bias):
    """Pure-JAX NCHW reference mirroring nn.Conv2d(C, C, 3, 2, 1)."""
    y = lax.conv_general_dilated(
        x, weight, window_strides=(2, 2), padding=((1, 1), (1, 1)),
        dimension_numbers=('NCHW', 'OIHW', 'NCHW'),
        precision=lax.Precision.HIGHEST)
    return y + bias[None, :, None, None]


if __name__ == "__main__":
    B, C, H, W = 2, 32, 16, 16

    key = jax.random.PRNGKey(0)
    kx, kw_, kb, kt = jax.random.split(key, 4)
    x = jax.random.normal(kx, (B, C, H, W), dtype=jnp.float32)
    weight = 0.05 * jax.random.normal(kw_, (C, C, 3, 3), dtype=jnp.float32)
    bias = 0.05 * jax.random.normal(kb, (C,), dtype=jnp.float32)
    time_emb = jax.random.normal(kt, (B, 128), dtype=jnp.float32)  # ignored

    y = downsamples_pallas(x, weight, bias, time_emb)
    y = jax.block_until_ready(y)

    y_ref = downsamples_reference(x, weight, bias)
    Ho, Wo = (H + 1) // 2, (W + 1) // 2
    assert y.shape == (B, C, Ho, Wo), y.shape
    max_err = float(jnp.max(jnp.abs(y - y_ref)))
    assert jnp.allclose(y, y_ref, atol=1e-3, rtol=1e-3), f"max abs diff {max_err}"

    print("KERNEL_OK")
</pallas_src>

<mosaic_0001>
module attributes {stable_mosaic.version = 11 : i64} {
  func.func @_conv3x3s2_kernel(%arg0: i32, %arg1: i32, %arg2: memref<1x8x9x64xf32, #tpu.memory_space<vmem>>, %arg3: memref<1x1x9x64xf32, #tpu.memory_space<vmem>>, %arg4: memref<1x8x9x64xf32, #tpu.memory_space<vmem>>, %arg5: memref<6x64x32xf32, #tpu.memory_space<vmem>>, %arg6: memref<1x32xf32, #tpu.memory_space<vmem>>, %arg7: memref<1x8x8x32xf32, #tpu.memory_space<vmem>>) attributes {dimension_semantics = [#tpu.dimension_semantics<parallel>, #tpu.dimension_semantics<parallel>], iteration_bounds = array<i64: 2, 1>, scalar_prefetch = 0 : i64, scratch_operands = 0 : i64, tpu.core_type = #tpu.core_type<tc>, window_params = [{transform_indices = @transform_0, window_bounds = array<i64: 1, 8, 9, 64>}, {transform_indices = @transform_1, window_bounds = array<i64: 1, 1, 9, 64>}, {transform_indices = @transform_2, window_bounds = array<i64: 1, 8, 9, 64>}, {pipeline_mode = #tpu.pipeline_mode<synchronous>, transform_indices = @transform_3, window_bounds = array<i64: 6, 64, 32>}, {pipeline_mode = #tpu.pipeline_mode<synchronous>, transform_indices = @transform_4, window_bounds = array<i64: 1, 32>}, {transform_indices = @transform_5, window_bounds = array<i64: 1, 8, 8, 32>}]} {
    %c0 = arith.constant 0 : index
    %c0_0 = arith.constant 0 : index
    %c0_1 = arith.constant 0 : index
    %c0_2 = arith.constant 0 : index
    %0 = vector.load %arg2[%c0, %c0_0, %c0_1, %c0_2] : memref<1x8x9x64xf32, #tpu.memory_space<vmem>>, vector<1x8x9x64xf32>
    %1 = vector.shape_cast %0 : vector<1x8x9x64xf32> to vector<8x9x64xf32>
    %c0_3 = arith.constant 0 : index
    %c0_4 = arith.constant 0 : index
    %c0_5 = arith.constant 0 : index
    %c0_6 = arith.constant 0 : index
    %2 = vector.load %arg3[%c0_3, %c0_4, %c0_5, %c0_6] : memref<1x1x9x64xf32, #tpu.memory_space<vmem>>, vector<1x1x9x64xf32>
    %3 = vector.shape_cast %2 : vector<1x1x9x64xf32> to vector<1x9x64xf32>
    %4 = tpu.concatenate %1, %3 in 0 : vector<8x9x64xf32>, vector<1x9x64xf32> -> vector<9x9x64xf32>
    %5 = vector.extract_strided_slice %4 {offsets = [0, 0, 0], sizes = [8, 9, 64], strides = [1, 1, 1]} : vector<9x9x64xf32> to vector<8x9x64xf32>
    %c0_7 = arith.constant 0 : index
    %c0_8 = arith.constant 0 : index
    %c0_9 = arith.constant 0 : index
    %c0_10 = arith.constant 0 : index
    %6 = vector.load %arg4[%c0_7, %c0_8, %c0_9, %c0_10] : memref<1x8x9x64xf32, #tpu.memory_space<vmem>>, vector<1x8x9x64xf32>
    %7 = vector.shape_cast %6 : vector<1x8x9x64xf32> to vector<8x9x64xf32>
    %8 = vector.extract_strided_slice %4 {offsets = [1, 0, 0], sizes = [8, 9, 64], strides = [1, 1, 1]} : vector<9x9x64xf32> to vector<8x9x64xf32>
    %cst = arith.constant 0.000000e+00 : f32
    %9 = vector.broadcast %cst : f32 to vector<64x32xf32>
    %10 = vector.extract_strided_slice %5 {offsets = [0, 0, 0], sizes = [8, 8, 64], strides = [1, 1, 1]} : vector<8x9x64xf32> to vector<8x8x64xf32>
    %11 = vector.shape_cast %10 : vector<8x8x64xf32> to vector<64x64xf32>
    %12 = vector.extract_strided_slice %5 {offsets = [0, 1, 0], sizes = [8, 8, 64], strides = [1, 1, 1]} : vector<8x9x64xf32> to vector<8x8x64xf32>
    %13 = vector.shape_cast %12 : vector<8x8x64xf32> to vector<64x64xf32>
    %c0_11 = arith.constant 0 : index
    %c0_12 = arith.constant 0 : index
    %c0_13 = arith.constant 0 : index
    %14 = vector.load %arg5[%c0_11, %c0_12, %c0_13] : memref<6x64x32xf32, #tpu.memory_space<vmem>>, vector<1x64x32xf32>
    %15 = vector.shape_cast %14 : vector<1x64x32xf32> to vector<64x32xf32>
    %cst_14 = arith.constant dense<0.000000e+00> : vector<64x32xf32>
    %16 = tpu.matmul %11, %15, %cst_14 {dimension_numbers = #tpu.dot_dimension_numbers<[1], [0], [0], [1], [0, 0, 1, 1], [], []>} : vector<64x64xf32>, vector<64x32xf32>, vector<64x32xf32> -> vector<64x32xf32>
    %17 = arith.addf %9, %16 : vector<64x32xf32>
    %c1 = arith.constant 1 : index
    %c0_15 = arith.constant 0 : index
    %c0_16 = arith.constant 0 : index
    %18 = vector.load %arg5[%c1, %c0_15, %c0_16] : memref<6x64x32xf32, #tpu.memory_space<vmem>>, vector<1x64x32xf32>
    %19 = vector.shape_cast %18 : vector<1x64x32xf32> to vector<64x32xf32>
    %cst_17 = arith.constant dense<0.000000e+00> : vector<64x32xf32>
    %20 = tpu.matmul %13, %19, %cst_17 {dimension_numbers = #tpu.dot_dimension_numbers<[1], [0], [0], [1], [0, 0, 1, 1], [], []>} : vector<64x64xf32>, vector<64x32xf32>, vector<64x32xf32> -> vector<64x32xf32>
    %21 = arith.addf %17, %20 : vector<64x32xf32>
    %22 = vector.extract_strided_slice %7 {offsets = [0, 0, 0], sizes = [8, 8, 64], strides = [1, 1, 1]} : vector<8x9x64xf32> to vector<8x8x64xf32>
    %23 = vector.shape_cast %22 : vector<8x8x64xf32> to vector<64x64xf32>
    %24 = vector.extract_strided_slice %7 {offsets = [0, 1, 0], sizes = [8, 8, 64], strides = [1, 1, 1]} : vector<8x9x64xf32> to vector<8x8x64xf32>
    %25 = vector.shape_cast %24 : vector<8x8x64xf32> to vector<64x64xf32>
    %c2 = arith.constant 2 : index
    %c0_18 = arith.constant 0 : index
    %c0_19 = arith.constant 0 : index
    %26 = vector.load %arg5[%c2, %c0_18, %c0_19] : memref<6x64x32xf32, #tpu.memory_space<vmem>>, vector<1x64x32xf32>
    %27 = vector.shape_cast %26 : vector<1x64x32xf32> to vector<64x32xf32>
    %cst_20 = arith.constant dense<0.000000e+00> : vector<64x32xf32>
    %28 = tpu.matmul %23, %27, %cst_20 {dimension_numbers = #tpu.dot_dimension_numbers<[1], [0], [0], [1], [0, 0, 1, 1], [], []>} : vector<64x64xf32>, vector<64x32xf32>, vector<64x32xf32> -> vector<64x32xf32>
    %29 = arith.addf %21, %28 : vector<64x32xf32>
    %c3 = arith.constant 3 : index
    %c0_21 = arith.constant 0 : index
    %c0_22 = arith.constant 0 : index
    %30 = vector.load %arg5[%c3, %c0_21, %c0_22] : memref<6x64x32xf32, #tpu.memory_space<vmem>>, vector<1x64x32xf32>
    %31 = vector.shape_cast %30 : vector<1x64x32xf32> to vector<64x32xf32>
    %cst_23 = arith.constant dense<0.000000e+00> : vector<64x32xf32>
    %32 = tpu.matmul %25, %31, %cst_23 {dimension_numbers = #tpu.dot_dimension_numbers<[1], [0], [0], [1], [0, 0, 1, 1], [], []>} : vector<64x64xf32>, vector<64x32xf32>, vector<64x32xf32> -> vector<64x32xf32>
    %33 = arith.addf %29, %32 : vector<64x32xf32>
    %34 = vector.extract_strided_slice %8 {offsets = [0, 0, 0], sizes = [8, 8, 64], strides = [1, 1, 1]} : vector<8x9x64xf32> to vector<8x8x64xf32>
    %35 = vector.shape_cast %34 : vector<8x8x64xf32> to vector<64x64xf32>
    %36 = vector.extract_strided_slice %8 {offsets = [0, 1, 0], sizes = [8, 8, 64], strides = [1, 1, 1]} : vector<8x9x64xf32> to vector<8x8x64xf32>
    %37 = vector.shape_cast %36 : vector<8x8x64xf32> to vector<64x64xf32>
    %c4 = arith.constant 4 : index
    %c0_24 = arith.constant 0 : index
    %c0_25 = arith.constant 0 : index
    %38 = vector.load %arg5[%c4, %c0_24, %c0_25] : memref<6x64x32xf32, #tpu.memory_space<vmem>>, vector<1x64x32xf32>
    %39 = vector.shape_cast %38 : vector<1x64x32xf32> to vector<64x32xf32>
    %cst_26 = arith.constant dense<0.000000e+00> : vector<64x32xf32>
    %40 = tpu.matmul %35, %39, %cst_26 {dimension_numbers = #tpu.dot_dimension_numbers<[1], [0], [0], [1], [0, 0, 1, 1], [], []>} : vector<64x64xf32>, vector<64x32xf32>, vector<64x32xf32> -> vector<64x32xf32>
    %41 = arith.addf %33, %40 : vector<64x32xf32>
    %c5 = arith.constant 5 : index
    %c0_27 = arith.constant 0 : index
    %c0_28 = arith.constant 0 : index
    %42 = vector.load %arg5[%c5, %c0_27, %c0_28] : memref<6x64x32xf32, #tpu.memory_space<vmem>>, vector<1x64x32xf32>
    %43 = vector.shape_cast %42 : vector<1x64x32xf32> to vector<64x32xf32>
    %cst_29 = arith.constant dense<0.000000e+00> : vector<64x32xf32>
    %44 = tpu.matmul %37, %43, %cst_29 {dimension_numbers = #tpu.dot_dimension_numbers<[1], [0], [0], [1], [0, 0, 1, 1], [], []>} : vector<64x64xf32>, vector<64x32xf32>, vector<64x32xf32> -> vector<64x32xf32>
    %45 = arith.addf %41, %44 : vector<64x32xf32>
    %c0_30 = arith.constant 0 : index
    %c0_31 = arith.constant 0 : index
    %46 = vector.load %arg6[%c0_30, %c0_31] : memref<1x32xf32, #tpu.memory_space<vmem>>, vector<1x32xf32>
    %47 = vector.broadcast %46 : vector<1x32xf32> to vector<64x32xf32>
    %48 = arith.addf %45, %47 : vector<64x32xf32>
    %49 = vector.shape_cast %48 : vector<64x32xf32> to vector<8x8x32xf32>
    %c0_32 = arith.constant 0 : index
    %c0_33 = arith.constant 0 : index
    %c0_34 = arith.constant 0 : index
    %c0_35 = arith.constant 0 : index
    %50 = vector.load %arg7[%c0_32, %c0_33, %c0_34, %c0_35] : memref<1x8x8x32xf32, #tpu.memory_space<vmem>>, vector<1x8x8x32xf32>
    %51 = vector.shape_cast %50 : vector<1x8x8x32xf32> to vector<8x8x32xf32>
    %52 = vector.shape_cast %49 : vector<8x8x32xf32> to vector<1x8x8x32xf32>
    tpu.vector_store %arg7[%c0_32, %c0_33, %c0_34, %c0_35], %52 {strides = array<i32>} : memref<1x8x8x32xf32, #tpu.memory_space<vmem>>, vector<1x8x8x32xf32>,
    return
  }
  func.func @transform_0(%arg0: i32, %arg1: i32) -> (i32, i32, i32, i32) {
    %c0_i32 = arith.constant 0 : i32
    %c0_i32_0 = arith.constant 0 : i32
    %c0_i32_1 = arith.constant 0 : i32
    return %arg0, %arg1, %c0_i32, %c0_i32_0 : i32, i32, i32, i32
  }
  func.func @transform_1(%arg0: i32, %arg1: i32) -> (i32, i32, i32, i32) {
    %c1_i32 = arith.constant 1 : i32
    %0 = arith.addi %arg1, %c1_i32 : i32
    %c8_i32 = arith.constant 8 : i32
    %1 = arith.muli %0, %c8_i32 : i32
    %c0_i32 = arith.constant 0 : i32
    %c0_i32_0 = arith.constant 0 : i32
    %c0_i32_1 = arith.constant 0 : i32
    return %arg0, %1, %c0_i32, %c0_i32_0 : i32, i32, i32, i32
  }
  func.func @transform_2(%arg0: i32, %arg1: i32) -> (i32, i32, i32, i32) {
    %c0_i32 = arith.constant 0 : i32
    %c0_i32_0 = arith.constant 0 : i32
    %c0_i32_1 = arith.constant 0 : i32
    return %arg0, %arg1, %c0_i32, %c0_i32_0 : i32, i32, i32, i32
  }
  func.func @transform_3(%arg0: i32, %arg1: i32) -> (i32, i32, i32) {
    %c0_i32 = arith.constant 0 : i32
    %c0_i32_0 = arith.constant 0 : i32
    %c0_i32_1 = arith.constant 0 : i32
    %c0_i32_2 = arith.constant 0 : i32
    return %c0_i32, %c0_i32_0, %c0_i32_1 : i32, i32, i32
  }
  func.func @transform_4(%arg0: i32, %arg1: i32) -> (i32, i32) {
    %c0_i32 = arith.constant 0 : i32
    %c0_i32_0 = arith.constant 0 : i32
    %c0_i32_1 = arith.constant 0 : i32
    return %c0_i32, %c0_i32_0 : i32, i32
  }
  func.func @transform_5(%arg0: i32, %arg1: i32) -> (i32, i32, i32, i32) {
    %c0_i32 = arith.constant 0 : i32
    %c0_i32_0 = arith.constant 0 : i32
    %c0_i32_1 = arith.constant 0 : i32
    return %arg0, %arg1, %c0_i32, %c0_i32_0 : i32, i32, i32, i32
  }
}

</mosaic_0001>

<bundles_post_ra>
// kernel: downsamples_pallas.1
= control target key start
LH: loop header
LB: loop body
LE: loop exit
PB: predicated region body
PF: predicated region fallthrough
CT: control target
= control target key end

     0   :  { %10 = vsyncpa [#allocation3], 0  ;;  %s2637_s0 = inlined_call_operand.vmem [shape: f32[2,9,9,64], index: 0, kind: input, shape index: {}, may-alias: {0,1}]   ;;  %s2638_s1 = inlined_call_operand.vmem [shape: f32[2,9,9,64], index: 1, kind: input, shape index: {}, may-alias: {0,1}]   ;;  %s2639_s2 = inlined_call_operand.vmem [shape: f32[2,9,9,64], index: 2, kind: input, shape index: {}]   ;;  %s2640_s3 = inlined_call_operand.vmem [shape: f32[6,64,32], index: 3, kind: input, shape index: {}]   ;;  %s2641_s4 = inlined_call_operand.vmem [shape: f32[1,32], index: 4, kind: input, shape index: {}]   ;;  %s2642_s5 = inlined_call_operand.hbm [shape: f32[2,8,8,32], index: 5, kind: output, shape index: {}]  }
   0x1   :  { %12 = vsyncpa [#allocation3 + $0x1], 0  ;;  %s2141_s18 = smov 0   ;;  %s2143_s19 = smov 0  }
   0x2   :  { %s2145_s20 = smov 0   ;;  %s2147_s21 = smov 0  }
   0x3   :  { %s2149_s22 = smov 0   ;;  %s2151_s23 = smov 0  }
   0x4 LB: > { %s1462_s24 = sadd.s32 4294967295, %s2106_s23   ;;  %s1463_s25 = sadd.s32 4294967294, %s2106_s23   ;;  %s2106_s23 = sphi %s2151_s23, %s18_s23   ;;  %s2102_s22 = sphi %s2149_s22, %s2649_s22   ;;  %s2098_s21 = sphi %s2147_s21, %s2648_s21   ;;  %s2094_s20 = sphi %s2145_s20, %s2647_s20   ;;  %s2090_s19 = sphi %s2143_s19, %s2646_s19   ;;  %s2086_s18 = sphi %s2141_s18, %s2645_s18  }
   0x5   : > { %s30_s26 = sadd.s32 1, %s2102_s22  ;;  %s169_s27 = sadd.s32 1, %s2094_s20 }
   0x6   : > { %p32_p0 = scmp.ge.s32.totalorder %s30_s26, 2  ;;  %p179_p1 = scmp.ne.s32.totalorder %s2094_s20, %s2090_s19 }
   0x7   : > { %p180_p2 = scmp.eq.s32.totalorder %s1462_s24, 1  ;;  %p185_p3 = scmp.ne.s32.totalorder %s2090_s19, %s2086_s18 }
   0x8   : > { %s2651_s26 = smov (%p32_p0, %s30_s26), 0  ;;  %p186_p5 = scmp.eq.s32.totalorder %s1463_s25, 1 }
   0x9   : > { %p2181_p4 = por %p180_p2, %p179_p1  ;;  %s164_s29 = ssub.s32 %s2102_s22, %s2651_s26 }
   0xa   : > { %p1466_p6 = scmp.ge.s32.totalorder %s2106_s23, 1  ;;  %p167_p7 = scmp.eq.s32.totalorder %s164_s29, 0 }
   0xb   : > { %p2188_p8 = por %p186_p5, %p185_p3  ;;  %p274_p9 = scmp.lt.s32.totalorder %s2106_s23, 3 }
   0xc   : > { %s2194_s6 = scalar_select %p167_p7, %s2094_s20, %s169_s27  }
   0xd   : > { %p275_p10 = pnand %p1466_p6, %p274_p9 }
   0xe   : > { %v1471_v0 = vld [vmem:[%s2640_s3 + $0x40] sm:$0xff] (!%p275_p10)  ;;  %v1472_v1 = vld [vmem:[%s2640_s3 + $0x48] sm:$0xff] (!%p275_p10)  ;;  %p344_p11 = scmp.lt.s32.totalorder (!%p275_p10), %s2098_s21, 1  ;;  %v1473_v5 = vld [vmem:[%s2640_s3 + $0x50] sm:$0xff] (!%p275_p10)  ;;  %vm444_vm0 = vcmask (!%p275_p10), 1046528   ;;  %vm486_vm1 = vcmask (!%p275_p10), 523264  }
   0xf   : > { %278 = sbr.rel (%p275_p10) target bundleno = 310 (0x136), region = 40  ;;  %v1511_v2 = vld [vmem:[%s2640_s3 + $0xc0] sm:$0xff] (!%p275_p10)  ;;  %v1832_v3 = vpack.c.bf16 (!%p275_p10), %v1472_v1, %v1471_v0  ;;  %v1512_v4 = vld [vmem:[%s2640_s3 + $0xc8] sm:$0xff] (!%p275_p10)  ;;  %v1474_v6 = vld [vmem:[%s2640_s3 + $0x58] sm:$0xff] (!%p275_p10)  ;;  %s335_s24 = sand.u32 (!%p275_p10), 1, %s2090_s19   ;;  %vm1313_vm2 = vcmask (!%p275_p10), 261120  }
  0x10   : > { %v1880_v7 = vpack.c.bf16 (!%p275_p10), %v1512_v4, %v1511_v2  ;;  %v1836_v8 = vpack.c.bf16 (!%p275_p10), %v1474_v6, %v1473_v5  ;;  %v1513_v9 = vld [vmem:[%s2640_s3 + $0xd0] sm:$0xff] (!%p275_p10)  ;;  %v1514_v10 = vld [vmem:[%s2640_s3 + $0xd8] sm:$0xff] (!%p275_p10)  ;;  %v1475_v11 = vld [vmem:[%s2640_s3 + $0x60] sm:$0xff] (!%p275_p10)  ;;  %s1467_s25 = sshll.u32 (!%p275_p10), %s335_s24, 6  ;;  %s1567_s7 = sshll.u32 (!%p275_p10), %s2098_s21, 10 }
  0x11   : > { %1833 = vmatprep.subr.bf16.mxu1 (!%p275_p10), %v1832_v3  ;;  %v1884_v12 = vpack.c.bf16 (!%p275_p10), %v1514_v10, %v1513_v9  ;;  %v1476_v13 = vld [vmem:[%s2640_s3 + $0x68] sm:$0xff] (!%p275_p10)  ;;  %v1515_v14 = vld [vmem:[%s2640_s3 + $0xe0] sm:$0xff] (!%p275_p10)  ;;  %v1477_v17 = vld [vmem:[%s2640_s3 + $0x70] sm:$0xff] (!%p275_p10)  ;;  %s2562_s29 = scalar_lea.vmem (!%p275_p10), [#allocation2], %s1467_s25  ;;  %s2581_s11 = scalar_lea.hbm (!%p275_p10), %s2642_s5, %s1567_s7 }
  0x12   : > { %v1516_v15 = vld [vmem:[%s2640_s3 + $0xe8] sm:$0xff] (!%p275_p10)  ;;  %1881 = vmatprep.subr.bf16.mxu0 (!%p275_p10), %v1880_v7  ;;  %1835 = vmatpush3.bf16.msra.mxu1 (!%p275_p10), %v1832_v3  ;;  %v1840_v16 = vpack.c.bf16 (!%p275_p10), %v1476_v13, %v1475_v11  ;;  %v1478_v19 = vld [vmem:[%s2640_s3 + $0x78] sm:$0xff] (!%p275_p10)  ;;  %v1517_v20 = vld [vmem:[%s2640_s3 + $0xf0] sm:$0xff] (!%p275_p10)  ;;  %s1338_s8 = sshll.u32 (!%p275_p10), %s2562_s29, 4  ;;  %s2108_s14 = smov (!%p275_p10), [#allocation2]   ;;  %s2583_s8 = int_to_ptr.vmem [resolvable:$true] %s1338_s8 }
  0x13   : > { %1883 = vmatpush3.bf16.msra.mxu0 (!%p275_p10), %v1880_v7  ;;  %1837 = vmatprep.subr.bf16.mxu1 (!%p275_p10), %v1836_v8  ;;  %v1888_v18 = vpack.c.bf16 (!%p275_p10), %v1516_v15, %v1515_v14  ;;  %v1518_v21 = vld [vmem:[%s2640_s3 + $0xf8] sm:$0xff] (!%p275_p10)  ;;  %v469_v29 = vld [vmem:[%s2640_s3] sm:$0xff] (!%p275_p10)  ;;  %v1844_v30 = vpack.c.bf16 (!%p275_p10), %v1478_v19, %v1477_v17  ;;  %v470_v34 = vld [vmem:[%s2640_s3 + $0x8] sm:$0xff] (!%p275_p10)  ;;  %s2028_s12 = scalar_lea.vmem (!%p275_p10), %s2583_s8, 1024 }
  0x14   : > { %1885 = vmatprep.subr.bf16.mxu0 (!%p275_p10), %v1884_v12  ;;  %v1892_v35 = vpack.c.bf16 (!%p275_p10), %v1518_v21, %v1517_v20  ;;  %v1527_v39 = vld [vmem:[%s2640_s3 + $0x100] sm:$0xff] (!%p275_p10)  ;;  %v1528_v41 = vld [vmem:[%s2640_s3 + $0x108] sm:$0xff] (!%p275_p10)  ;;  %v1848_v48 = vpack.c.bf16 (!%p275_p10), %v470_v34, %v469_v29  ;;  %v471_v53 = vld [vmem:[%s2640_s3 + $0x10] sm:$0xff] (!%p275_p10)  ;;  %p2029_p12 = scmp.ne.s32.totalorder (!%p275_p10), %s2583_s8, %s2028_s12 }
  0x15   : > { %v1896_v54 = vpack.c.bf16 (!%p275_p10), %v1528_v41, %v1527_v39  ;;  %v472_v57 = vld [vmem:[%s2640_s3 + $0x18] sm:$0xff] (!%p275_p10)  ;;  %v1529_v62 = vld [vmem:[%s2640_s3 + $0x110] sm:$0xff] (!%p275_p10)  ;;  %v474_v17 = vld [vmem:[%s2640_s3 + $0x28] sm:$0xff] (!%p275_p10) }
  0x16   : > { %s345_s10 = scalar_select %p344_p11, %s2098_s21, 1  ;;  %1839 = vmatpush3.bf16.msra.mxu1 %v1836_v8  ;;  %v1530_v4 = vld [vmem:[%s2640_s3 + $0x118] sm:$0xff]  ;;  %v1852_v14 = vpack.c.bf16 %v472_v57, %v471_v53 }
  0x17   : > { %1887 = vmatpush3.bf16.msra.mxu0 %v1884_v12  ;;  %1841 = vmatprep.subr.bf16.mxu1 %v1840_v16  ;;  %v473_v12 = vld [vmem:[%s2640_s3 + $0x20] sm:$0xff]  ;;  %v1900_v21 = vpack.c.bf16 %v1530_v4, %v1529_v62  ;;  %v1534_v62 = vld [vmem:[%s2640_s3 + $0x138] sm:$0xff]  ;;  %s2591_s21 = scalar_lea.sflag [#allocation3], %s335_s24  ;;  %p2030_p13 = pnand %p2029_p12, %p2181_p4 }
  0x18   : > { %s2234_s17 = smul.u32 144, %s345_s10  ;;  %1889 = vmatprep.subr.bf16.mxu0 %v1888_v18 }
  0x19   : > { %p2031_p0 = pneg %p2030_p13 }
  0x1a   : > { %s2252_s13 = scalar_lea.vmem %s2637_s0, %s2234_s17  ;;  %s2258_s16 = scalar_lea.vmem %s2639_s2, %s2234_s17  ;;  %1843 = vmatpush3.bf16.msra.mxu1 %v1840_v16 }
  0x1b   : > { %v2261_v22 = vld [vmem:[%s2252_s13] sm:$0xff]  ;;  %v395_v23 = vld [vmem:[%s2252_s13 + $0x8] sm:$0x1]  ;;  %v2274_v32 = vld [vmem:[%s2252_s13 + $0x10] sm:$0xff]  ;;  %1891 = vmatpush3.bf16.msra.mxu0 %v1888_v18  ;;  %1845 = vmatprep.subr.bf16.mxu1 %v1844_v30  ;;  %s1566_s9 = sadd.s32 128, %s2234_s17  ;;  %s2032_s17 = sshll.u32 %s2108_s14, 4  ;;  %s2033_s17 = int_to_ptr.vmem [resolvable:$false] %s2032_s17 }
  0x1c   : > { %v2265_v24 = vld [vmem:[%s2258_s16] sm:$0xff]  ;;  %v445_v25 = vrot.slane %v2261_v22, 1  ;;  %v446_v26 = vrot.slane %v395_v23, 1  ;;  %v413_v27 = vld [vmem:[%s2258_s16 + $0x8] sm:$0x1]  ;;  %v2282_v37 = vld [vmem:[%s2258_s16 + $0x10] sm:$0xff]  ;;  %1893 = vmatprep.subr.bf16.mxu0 %v1892_v35  ;;  %p2035_p1 = scmp.lt.s32.totalorder %s2583_s8, %s2033_s17 }
  0x1d   : > { %v745_v28 = vrot.slane %v2265_v24, 1  ;;  %v746_v31 = vrot.slane %v413_v27, 1  ;;  %v397_v33 = vld [vmem:[%s2252_s13 + $0x18] sm:$0x1]  ;;  %v2294_v42 = vld [vmem:[%s2252_s13 + $0x20] sm:$0xff]  ;;  %v448_v44 = vrot.slane %v2274_v32, 1 }
  0x1e   : > { %v447_v36 = vsel %vm444_vm0, %v445_v25, %v446_v26  ;;  %v415_v38 = vld [vmem:[%s2258_s16 + $0x18] sm:$0x1]  ;;  %v399_v43 = vld [vmem:[%s2252_s13 + $0x28] sm:$0x1]  ;;  %v449_v45 = vrot.slane %v397_v33, 1  ;;  %v2300_v46 = vld [vmem:[%s2258_s16 + $0x20] sm:$0xff]  ;;  %1847 = vmatpush3.bf16.msra.mxu1 %v1844_v30 }
  0x1f   : > { %1680 = vmatprep.mubr.msk.f32.mxu1 %vm486_vm1, %v447_v36  ;;  %v747_v40 = vsel %vm444_vm0, %v745_v28, %v746_v31  ;;  %v417_v47 = vld [vmem:[%s2258_s16 + $0x28] sm:$0x1]  ;;  %v748_v49 = vrot.slane %v2282_v37, 1  ;;  %v749_v50 = vrot.slane %v415_v38, 1  ;;  %v2305_v51 = vld [vmem:[%s2252_s13 + $0x30] sm:$0xff]  ;;  %v451_v55 = vrot.slane %v2294_v42, 1  ;;  %1895 = vmatpush3.bf16.msra.mxu0 %v1892_v35 }
  0x20   : > { %1764 = vmatprep.mubr.msk.f32.mxu0 %vm486_vm1, %v747_v40  ;;  %v401_v52 = vld [vmem:[%s2252_s13 + $0x38] sm:$0x1]  ;;  %v452_v56 = vrot.slane %v399_v43, 1  ;;  %v2316_v58 = vld [vmem:[%s2258_s16 + $0x30] sm:$0xff]  ;;  %v751_v60 = vrot.slane %v2300_v46, 1  ;;  %v752_v61 = vrot.slane %v417_v47, 1  ;;  %v2328_v1 = vsel %vm444_vm0, %v448_v44, %v449_v45  ;;  %1849 = vmatprep.subr.bf16.mxu1 %v1848_v48 }
  0x21   : > { %v419_v59 = vld [vmem:[%s2258_s16 + $0x38] sm:$0x1]  ;;  %v2324_v63 = vld [vmem:[%s2252_s13 + $0x40] sm:$0xff]  ;;  %v403_v0 = vld [vmem:[%s2252_s13 + $0x48] sm:$0x1]  ;;  %v454_v2 = vrot.slane %v2305_v51, 1  ;;  %v750_v7 = vsel %vm444_vm0, %v748_v49, %v749_v50  ;;  %1897 = vmatprep.subr.bf16.mxu0 %v1896_v54  ;;  %1681 = vmatmul.mubr.msk.f32.vlgmr.msra.gmra.mrb[0].mxu1 %vm486_vm1, %v2328_v1  ;;  %v1856_v44 = vpack.c.bf16 %v474_v17, %v473_v12 }
  0x22   : > { %v455_v3 = vrot.slane %v401_v52, 1  ;;  %v2335_v5 = vld [vmem:[%s2258_s16 + $0x40] sm:$0xff]  ;;  %v421_v6 = vld [vmem:[%s2258_s16 + $0x48] sm:$0x1]  ;;  %v754_v8 = vrot.slane %v2316_v58, 1  ;;  %v755_v9 = vrot.slane %v419_v59, 1  ;;  %v2348_v13 = vsel %vm444_vm0, %v451_v55, %v452_v56  ;;  %1765 = vmatmul.mubr.msk.f32.vlgmr.msra.gmra.mrb[0].mxu0 %vm486_vm1, %v750_v7  ;;  %1851 = vmatpush3.bf16.msra.mxu1 %v1848_v48 }
  0x23   : > { %v2341_v10 = vld [vmem:[%s2252_s13 + $0x50] sm:$0xff]  ;;  %v405_v11 = vld [vmem:[%s2252_s13 + $0x58] sm:$0x1]  ;;  %v457_v15 = vrot.slane %v2324_v63, 1  ;;  %v458_v16 = vrot.slane %v403_v0, 1  ;;  %v753_v20 = vsel %vm444_vm0, %v751_v60, %v752_v61  ;;  %v757_v23 = vrot.slane %v2335_v5, 1  ;;  %1899 = vmatpush3.bf16.msra.mxu0 %v1896_v54  ;;  %1683 = vmatprep.mubr.msk.f32.mxu1 %vm486_vm1, %v2348_v13 }
  0x24   : > { %v2355_v18 = vld [vmem:[%s2258_s16 + $0x50] sm:$0xff]  ;;  %v423_v19 = vld [vmem:[%s2258_s16 + $0x58] sm:$0x1]  ;;  %v758_v25 = vrot.slane %v421_v6, 1  ;;  %v1531_v26 = vld [vmem:[%s2640_s3 + $0x120] sm:$0xff]  ;;  %v2371_v29 = vsel %vm444_vm0, %v454_v2, %v455_v3  ;;  %v460_v30 = vrot.slane %v2341_v10, 1  ;;  %v756_v36 = vsel %vm444_vm0, %v754_v8, %v755_v9  ;;  %1767 = vmatprep.mubr.msk.f32.mxu0 %vm486_vm1, %v753_v20  ;;  %1853 = vmatprep.subr.bf16.mxu1 %v1852_v14 }
  0x25   : > { %v2366_v27 = vld [vmem:[%s2252_s13 + $0x60] sm:$0xff]  ;;  %v407_v28 = vld [vmem:[%s2252_s13 + $0x68] sm:$0x1]  ;;  %v461_v31 = vrot.slane %v405_v11, 1  ;;  %v760_v38 = vrot.slane %v2355_v18, 1  ;;  %v761_v39 = vrot.slane %v423_v19, 1  ;;  %v2391_v43 = vsel %vm444_vm0, %v457_v15, %v458_v16  ;;  %1684 = vmatmul.mubr.msk.f32.gmra.mrb[2].mxu1 %vm486_vm1, %v2371_v29  ;;  %1901 = vmatprep.subr.bf16.mxu0 %v1900_v21 }
  0x26   : > { %v1532_v33 = vld [vmem:[%s2640_s3 + $0x128] sm:$0xff]  ;;  %v2378_v34 = vld [vmem:[%s2258_s16 + $0x60] sm:$0xff]  ;;  %v2386_v40 = vld [vmem:[%s2252_s13 + $0x70] sm:$0xff]  ;;  %v463_v45 = vrot.slane %v2366_v27, 1  ;;  %v464_v47 = vrot.slane %v407_v28, 1  ;;  %v759_v50 = vsel %vm444_vm0, %v757_v23, %v758_v25  ;;  %1768 = vmatmul.mubr.msk.f32.gmra.mrb[2].mxu0 %vm486_vm1, %v756_v36  ;;  %1855 = vmatpush3.bf16.msra.mxu1 %v1852_v14  ;;  %s2034_s15 = scalar_lea.vmem %s2033_s17, 2048 }
  0x27   : > { %v425_v35 = vld [vmem:[%s2258_s16 + $0x68] sm:$0x1]  ;;  %v409_v41 = vld [vmem:[%s2252_s13 + $0x78] sm:$0x1]  ;;  %v2395_v48 = vld [vmem:[%s2258_s16 + $0x70] sm:$0xff]  ;;  %v1904_v52 = vpack.c.bf16 %v1532_v33, %v1531_v26  ;;  %v763_v53 = vrot.slane %v2378_v34, 1  ;;  %v2410_v57 = vsel %vm444_vm0, %v460_v30, %v461_v31  ;;  %1903 = vmatpush3.bf16.msra.mxu0 %v1900_v21  ;;  %1686 = vmatprep.mubr.msk.f32.mxu1 %vm486_vm1, %v2391_v43  ;;  %v762_v0 = vsel %vm444_vm0, %v760_v38, %v761_v39  ;;  %s369_s13 = scalar_lea.vmem %s2638_s1, %s1566_s9  ;;  %p2036_p2 = scmp.lt.s32.totalorder %s2034_s15, %s2028_s12 }
  0x28   : > { %v427_v49 = vld [vmem:[%s2258_s16 + $0x78] sm:$0x1]  ;;  %v764_v54 = vrot.slane %v425_v35, 1  ;;  %v475_v55 = vld [vmem:[%s2640_s3 + $0x30] sm:$0xff]  ;;  %v466_v59 = vrot.slane %v2386_v40, 1  ;;  %v467_v60 = vrot.slane %v409_v41, 1  ;;  %1770 = vmatprep.mubr.msk.f32.mxu0 %vm486_vm1, %v759_v50  ;;  %1857 = vmatprep.subr.bf16.mxu1 %v1856_v44  ;;  %v2425_v4 = vsel %vm444_vm0, %v463_v45, %v464_v47 }
  0x29   : > { %v476_v56 = vld [vmem:[%s2640_s3 + $0x38] sm:$0xff]  ;;  %v1533_v61 = vld [vmem:[%s2640_s3 + $0x130] sm:$0xff]  ;;  %v766_v2 = vrot.slane %v2395_v48, 1  ;;  %v767_v3 = vrot.slane %v427_v49, 1  ;;  %1687 = vmatmul.mubr.msk.f32.gmra.mrb[4].mxu1 %vm486_vm1, %v2410_v57  ;;  %1905 = vmatprep.subr.bf16.mxu0 %v1904_v52  ;;  %v1495_v9 = vld [vmem:[%s2640_s3 + $0x80] sm:$0xff]  ;;  %p2037_p3 = por %p2036_p2, %p2035_p1 }
  0x2a   : > { %v1860_v6 = vpack.c.bf16 %v476_v56, %v475_v55  ;;  %v765_v7 = vsel %vm444_vm0, %v763_v53, %v764_v54  ;;  %v1908_v8 = vpack.c.bf16 %v1534_v62, %v1533_v61  ;;  %v1496_v11 = vld [vmem:[%s2640_s3 + $0x88] sm:$0xff]  ;;  %1771 = vmatmul.mubr.msk.f32.gmra.mrb[4].mxu0 %vm486_vm1, %v762_v0  ;;  %1859 = vmatpush3.bf16.msra.mxu1 %v1856_v44  ;;  %v1543_v14 = vld [vmem:[%s2640_s3 + $0x140] sm:$0xff]  ;;  %v1497_v20 = vld [vmem:[%s2640_s3 + $0x90] sm:$0xff] }
  0x2b   : > { %v2438_v12 = vsel %vm444_vm0, %v466_v59, %v467_v60  ;;  %v1544_v15 = vld [vmem:[%s2640_s3 + $0x148] sm:$0xff]  ;;  %1907 = vmatpush3.bf16.msra.mxu0 %v1904_v52  ;;  %1689 = vmatprep.mubr.msk.f32.mxu1 %vm486_vm1, %v2425_v4  ;;  %v768_v16 = vsel %vm444_vm0, %v766_v2, %v767_v3  ;;  %v1864_v17 = vpack.c.bf16 %v1496_v11, %v1495_v9  ;;  %v1498_v21 = vld [vmem:[%s2640_s3 + $0x98] sm:$0xff]  ;;  %v1545_v23 = vld [vmem:[%s2640_s3 + $0x150] sm:$0xff]  ;;  %p2038_p5 = pnand %p2037_p3, %p2031_p0 }
  0x2c   : > { %1773 = vmatprep.mubr.msk.f32.mxu0 %vm486_vm1, %v765_v7  ;;  %1861 = vmatprep.subr.bf16.mxu1 %v1860_v6  ;;  %v1912_v19 = vpack.c.bf16 %v1544_v15, %v1543_v14  ;;  %v1546_v25 = vld [vmem:[%s2640_s3 + $0x158] sm:$0xff]  ;;  %v1868_v26 = vpack.c.bf16 %v1498_v21, %v1497_v20  ;;  %v1499_v30 = vld [vmem:[%s2640_s3 + $0xa0] sm:$0xff]  ;;  %v1500_v31 = vld [vmem:[%s2640_s3 + $0xa8] sm:$0xff] }
  0x2d   : > { %1690 = vmatmul.mubr.msk.f32.gmra.mrb[6].mxu1 %vm486_vm1, %v2438_v12  ;;  %1909 = vmatprep.subr.bf16.mxu0 %v1908_v8  ;;  %v1916_v28 = vpack.c.bf16 %v1546_v25, %v1545_v23  ;;  %v1872_v33 = vpack.c.bf16 %v1500_v31, %v1499_v30  ;;  %v1501_v36 = vld [vmem:[%s2640_s3 + $0xb0] sm:$0xff]  ;;  %v1502_v38 = vld [vmem:[%s2640_s3 + $0xb8] sm:$0xff] }
  0x2e   : > { %1774 = vmatmul.mubr.msk.f32.gmra.mrb[6].mxu0 %vm486_vm1, %v768_v16  ;;  %1863 = vmatpush3.bf16.msra.mxu1 %v1860_v6  ;;  %v1876_v39 = vpack.c.bf16 %v1502_v38, %v1501_v36 }
  0x2f   : > { %1911 = vmatpush3.bf16.msra.mxu0 %v1908_v8  ;;  %1708 = vmatprep.mubr.msk.f32.mxu1 %vm486_vm1, %v2261_v22  ;;  %v1547_v22 = vld [vmem:[%s2640_s3 + $0x160] sm:$0xff] }
  0x30   : > { %1792 = vmatprep.mubr.msk.f32.mxu0 %vm486_vm1, %v2274_v32  ;;  %1865 = vmatprep.subr.bf16.mxu1 %v1864_v17 }
  0x31   : > { %1709 = vmatmul.mubr.msk.f32.vlgmr.msra.gmra.mrb[0].mxu1 %vm486_vm1, %v2274_v32  ;;  %1913 = vmatprep.subr.bf16.mxu0 %v1912_v19  ;;  %v1548_v32 = vld [vmem:[%s2640_s3 + $0x168] sm:$0xff] }
  0x32   : > { %1793 = vmatmul.mubr.msk.f32.vlgmr.msra.gmra.mrb[0].mxu0 %vm486_vm1, %v2294_v42  ;;  %1867 = vmatpush3.bf16.msra.mxu1 %v1864_v17  ;;  %v1920_v35 = vpack.c.bf16 %v1548_v32, %v1547_v22 }
  0x33   : > { %1915 = vmatpush3.bf16.msra.mxu0 %v1912_v19  ;;  %1711 = vmatprep.mubr.msk.f32.mxu1 %vm486_vm1, %v2294_v42  ;;  %v1549_v42 = vld [vmem:[%s2640_s3 + $0x170] sm:$0xff] }
  0x34   : > { %1795 = vmatprep.mubr.msk.f32.mxu0 %vm486_vm1, %v2305_v51  ;;  %1869 = vmatprep.subr.bf16.mxu1 %v1868_v26 }
  0x35   : > { %1712 = vmatmul.mubr.msk.f32.gmra.mrb[2].mxu1 %vm486_vm1, %v2305_v51  ;;  %1917 = vmatprep.subr.bf16.mxu0 %v1916_v28  ;;  %v1550_v51 = vld [vmem:[%s2640_s3 + $0x178] sm:$0xff] }
  0x36   : > { %1796 = vmatmul.mubr.msk.f32.gmra.mrb[2].mxu0 %vm486_vm1, %v2324_v63  ;;  %1871 = vmatpush3.bf16.msra.mxu1 %v1868_v26  ;;  %v1924_v41 = vpack.c.bf16 %v1550_v51, %v1549_v42 }
  0x37   : > { %1919 = vmatpush3.bf16.msra.mxu0 %v1916_v28  ;;  %1714 = vmatprep.mubr.msk.f32.mxu1 %vm486_vm1, %v2324_v63  ;;  %v410_v63 = vld [vmem:[%s369_s13] sm:$0xff] }
  0x38   : > { %1798 = vmatprep.mubr.msk.f32.mxu0 %vm486_vm1, %v2341_v10  ;;  %1873 = vmatprep.subr.bf16.mxu1 %v1872_v33 }
  0x39   : > { %1715 = vmatmul.mubr.msk.f32.gmra.mrb[4].mxu1 %vm486_vm1, %v2341_v10  ;;  %1921 = vmatprep.subr.bf16.mxu0 %v1920_v35  ;;  %v411_v10 = vld [vmem:[%s369_s13 + $0x8] sm:$0x1] }
  0x3a   : > { %1799 = vmatmul.mubr.msk.f32.gmra.mrb[4].mxu0 %vm486_vm1, %v2366_v27  ;;  %1875 = vmatpush3.bf16.msra.mxu1 %v1872_v33 }
  0x3b   : > { %1923 = vmatpush3.bf16.msra.mxu0 %v1920_v35  ;;  %1717 = vmatprep.mubr.msk.f32.mxu1 %vm486_vm1, %v2366_v27 }
  0x3c   : > { %1801 = vmatprep.mubr.msk.f32.mxu0 %vm486_vm1, %v2386_v40  ;;  %1877 = vmatprep.subr.bf16.mxu1 %v1876_v39 }
  0x3d   : > { %1718 = vmatmul.mubr.msk.f32.gmra.mrb[6].mxu1 %vm486_vm1, %v2386_v40  ;;  %1925 = vmatprep.subr.bf16.mxu0 %v1924_v41 }
  0x3e   : > { %1802 = vmatmul.mubr.msk.f32.gmra.mrb[6].mxu0 %vm486_vm1, %v410_v63  ;;  %1879 = vmatpush3.bf16.msra.mxu1 %v1876_v39 }
  0x3f   : > { %1927 = vmatpush3.bf16.msra.mxu0 %v1924_v41  ;;  %1736 = vmatprep.mubr.msk.f32.mxu1 %vm486_vm1, %v2265_v24  ;;  %v1047_v24 = vrot.slane %v410_v63, 1 }
  0x40   : > { %1820 = vmatprep.mubr.msk.f32.mxu0 %vm486_vm1, %v2328_v1 }
  0x41   : > { %1737 = vmatmul.mubr.msk.f32.vlgmr.msra.gmra.mrb[0].mxu1 %vm486_vm1, %v2282_v37  ;;  %v1048_v37 = vrot.slane %v411_v10, 1 }
  0x42   : > { %1821 = vmatmul.mubr.msk.f32.vlgmr.msra.gmra.mrb[0].mxu0 %vm486_vm1, %v2348_v13  ;;  %1739 = vmatprep.mubr.msk.f32.mxu1 %vm486_vm1, %v2300_v46 }
  0x43   : > { %1823 = vmatprep.mubr.msk.f32.mxu0 %vm486_vm1, %v2371_v29  ;;  %v1049_v46 = vsel %vm444_vm0, %v1047_v24, %v1048_v37 }
  0x45   : > { %1740 = vmatmul.mubr.msk.f32.gmra.mrb[2].mxu1 %vm486_vm1, %v2316_v58 }
  0x46   : > { %1824 = vmatmul.mubr.msk.f32.gmra.mrb[2].mxu0 %vm486_vm1, %v2391_v43  ;;  %1742 = vmatprep.mubr.msk.f32.mxu1 %vm486_vm1, %v2335_v5  ;;  %v1559_v5 = vld [vmem:[%s2641_s4] ss:$0 sm:$0xff] }
  0x47   : > { %1826 = vmatprep.mubr.msk.f32.mxu0 %vm486_vm1, %v2410_v57 }
  0x49   : > { %1743 = vmatmul.mubr.msk.f32.gmra.mrb[4].mxu1 %vm486_vm1, %v2355_v18 }
  0x4a   : > { %1827 = vmatmul.mubr.msk.f32.gmra.mrb[4].mxu0 %vm486_vm1, %v2425_v4  ;;  %1745 = vmatprep.mubr.msk.f32.mxu1 %vm486_vm1, %v2378_v34 }
  0x4b   : > { %1829 = vmatprep.mubr.msk.f32.mxu0 %vm486_vm1, %v2438_v12 }
  0x4d   : > { %1746 = vmatmul.mubr.msk.f32.gmra.mrb[6].mxu1 %vm486_vm1, %v2395_v48 }
  0x4e   : > { %1830 = vmatmul.mubr.msk.f32.gmra.mrb[6].mxu0 %vm486_vm1, %v1049_v46 }
 0x114   : > { %v1738_v58 = vpop.f32.mrb[0].mxu1 }
 0x115   : > { %v1822_v1 = vpop.f32.mrb[0].mxu0  ;;  %v860_v13 = vpop.f32.mrb[1].mxu1 }
 0x116   : > { %v1928_v18 = vadd.f32 %v1822_v1, %v1738_v58  ;;  %v1251_v27 = vpop.f32.mrb[1].mxu0 }
 0x117   : > { %v1929_v29 = vadd.f32 %v1251_v27, %v860_v13 }
 0x118   : > { %v1306_v34 = vadd.f32 %v1928_v18, %v1559_v5  ;;  %v1741_v40 = vpop.f32.mrb[2].mxu1 }
 0x119   : > { %v1305_v43 = vadd.f32 %v1929_v29, %v1559_v5  ;;  %v1825_v44 = vpop.f32.mrb[2].mxu0  ;;  %v870_v45 = vpop.f32.mrb[3].mxu1 }
 0x11a   : > { %1315 = vst.msk [vmem:[%s2562_s29 + $0x8] sm:$0xff] %vm1313_vm2, %v1306_v34  ;;  %v1930_v47 = vadd.f32 %v1825_v44, %v1741_v40  ;;  %v1261_v48 = vpop.f32.mrb[3].mxu0 }
 0x11b   : > { %1314 = vst.msk [vmem:[%s2562_s29] sm:$0xff] %vm1313_vm2, %v1305_v43  ;;  %v1931_v49 = vadd.f32 %v1261_v48, %v870_v45 }
 0x11c   : > { %v1308_v50 = vadd.f32 %v1930_v47, %v1559_v5  ;;  %v1744_v52 = vpop.f32.mrb[4].mxu1 }
 0x11d   : > { %v1307_v53 = vadd.f32 %v1931_v49, %v1559_v5  ;;  %v1828_v54 = vpop.f32.mrb[4].mxu0  ;;  %v880_v55 = vpop.f32.mrb[5].mxu1 }
 0x11e   : > { %1317 = vst.msk [vmem:[%s2562_s29 + $0x18] sm:$0xff] %vm1313_vm2, %v1308_v50  ;;  %v1932_v56 = vadd.f32 %v1828_v54, %v1744_v52  ;;  %v1271_v57 = vpop.f32.mrb[5].mxu0 }
 0x11f   : > { %1316 = vst.msk [vmem:[%s2562_s29 + $0x10] sm:$0xff] %vm1313_vm2, %v1307_v53  ;;  %v1933_v59 = vadd.f32 %v1271_v57, %v880_v55 }
 0x120   : > { %v1310_v60 = vadd.f32 %v1932_v56, %v1559_v5  ;;  %v1747_v61 = vpop.f32.mrb[6].mxu1 }
 0x121   : > { %v1309_v62 = vadd.f32 %v1933_v59, %v1559_v5  ;;  %v1831_v0 = vpop.f32.mrb[6].mxu0  ;;  %v890_v2 = vpop.f32.mrb[7].mxu1 }
 0x122   : > { %1319 = vst.msk [vmem:[%s2562_s29 + $0x28] sm:$0xff] %vm1313_vm2, %v1310_v60  ;;  %v1934_v3 = vadd.f32 %v1831_v0, %v1747_v61  ;;  %v1281_v4 = vpop.f32.mrb[7].mxu0 }
 0x123   : > { %1318 = vst.msk [vmem:[%s2562_s29 + $0x20] sm:$0xff] %vm1313_vm2, %v1309_v62  ;;  %v1935_v6 = vadd.f32 %v1281_v4, %v890_v2 }
 0x124   : > { %v1312_v7 = vadd.f32 %v1934_v3, %v1559_v5 }
 0x125   : > { %v1311_v8 = vadd.f32 %v1935_v6, %v1559_v5 }
 0x126   : > { %1321 = vst.msk [vmem:[%s2562_s29 + $0x38] sm:$0xff] %vm1313_vm2, %v1312_v7 }
 0x127   : > { %1320 = vst.msk [vmem:[%s2562_s29 + $0x30] sm:$0xff] %vm1313_vm2, %v1311_v8 }
 0x128   : > { %2041 = shalt.err (!%p2038_p5)
}
 0x129   : > { %s2042_s13 = scalar_lea.hbm %s2581_s11, 1024  ;;  %s2046_s27 = scalar_lea.hbm %s2642_s5, 2048 }
 0x12a   : > { %p2043_p6 = scmp.ne.s32.totalorder %s2581_s11, %s2042_s13  ;;  %p2047_p10 = scmp.lt.u32.totalorder %s2581_s11, %s2642_s5 }
 0x12b   : > { %p2048_p11 = scmp.lt.u32.totalorder %s2046_s27, %s2042_s13  ;;  %p2050_p13 = scmp.lt.u32.totalorder %s2042_s13, %s2581_s11 }
 0x12c   : > { %p2044_p7 = pnand %p2043_p6, %p2181_p4 }
 0x12d   : > { %p2049_p12 = por %p2048_p11, %p2047_p10 }
 0x12e   : > { %p2045_p9 = pneg %p2044_p7 }
 0x12f   : > { %p2051_p0 = por %p2050_p13, %p2049_p12 }
 0x131   : > { %p2052_p1 = pnand %p2051_p0, %p2045_p9 }
 0x133   : > { %2055 = shalt.err (!%p2052_p1)
}
 0x134   : > { %s2109_s7 = smov 128   ;;  %s2110_s9 = smov 8  }
 0x135   : > { %1970 = dma.vmem_to_hbm [thread:$0]  (%p2181_p4), %s2583_s8, 1024, %s2581_s11, %s2591_s21, %s2109_s7, %s2109_s7, %s2110_s9  }
 0x136 PF: > { %p1977_p2 = scmp.ge.s32.totalorder %s2106_s23, 2  ;;  %s1353_s10 = sand.u32 1, %s2086_s18  }
 0x137   : > { %s1354_s12 = scalar_lea.sflag [#allocation3], %s1353_s10 }
 0x138   : > { %p1973_p3 = pnand %p1977_p2, %p2188_p8 }
 0x13a   : > { %2081 = dma.done.wait (!%p1973_p3), %s1354_s12, 1024  }
 0x13b   : > { %2083 = vsyncadd (!%p1973_p3), %s1354_s12, 4294966272  ;;  %s18_s23 = sadd.s32 1, %s2106_s23   ;;  %s2645_s18 = smov %s2090_s19 }
 0x13c   : > { %p15_p5 = scmp.ge.s32.totalorder %s18_s23, 4   ;;  %s2646_s19 = smov %s2094_s20 }
 0x13d   : > { %s2647_s20 = smov %s2194_s6  ;;  %s2648_s21 = smov %s2102_s22 }
 0x13e   : > { %s2649_s22 = smov %s2651_s26  ;;  %17 = sbr.rel (!%p15_p5) target bundleno = 4 (0x4), region = 86 }
 0x145   :  { %1359 = vsyncpa [#allocation3], 1 }
 0x146   :  { %1361 = vsyncpa [#allocation3 + $0x1], 1 }

</bundles_post_ra>
